<compile_context>
chip_gen: v5e
topology: v5e:2x2
jax: 0.10.0
libtpu: 0.0.40
codegen_flags: <defaults>
</compile_context>

<pallas_src>
import jax
import jax.numpy as jnp
from jax.experimental import pallas as pl
from jax.experimental.pallas import tpu as pltpu


def _round_up(n, m):
    return ((n + m - 1) // m) * m


def _round8(n):
    return _round_up(n, 8)


def mlp_kernel(xt_ref, w1t_ref, b1_ref, w2t_ref, b2_ref, ot_ref):
    # Batch sits on the 128-wide lane axis; feature dims (2/10/3) sit on sublanes.
    # Layer 1: h^T = W1^T @ x^T + b1, ReLU      -> [hidden, TILE_B]
    h = jnp.dot(w1t_ref[...], xt_ref[...], preferred_element_type=jnp.float32)
    h = jnp.maximum(h + b1_ref[...], 0.0)          # b1 is [hidden, 1], broadcasts over lanes
    # Layer 2: y^T = W2^T @ h^T + b2            -> [f_out, TILE_B]  (lane-dense store)
    y = jnp.dot(w2t_ref[...], h.astype(w2t_ref.dtype),
                preferred_element_type=jnp.float32)
    ot_ref[...] = (y + b2_ref[...]).astype(ot_ref.dtype)


def mlp_forward_t(x_t, w1, b1, w2, b2, *, tile_b=65536, stream_in_bf16=False):
    """Feature-major fused MLP: x_t [f_in, batch] -> [f_out, batch] (float32).

    batch must be a multiple of 128.  This entry point adds no wrapper-side
    HBM relayout passes; kernel traffic is the true per-row byte floor.
    """
    f_in, b = x_t.shape
    hidden = w1.shape[1]
    f_out = w2.shape[1]
    if b % 128 != 0:
        raise ValueError("mlp_forward_t requires batch % 128 == 0 "
                         "(use mlp_forward for arbitrary batch).")

    elem_in = 2 if stream_in_bf16 else 4
    # VMEM bytes per batch column: double-buffered x^T and y^T blocks plus a few
    # hidden-width f32 temporaries (pre-bias / post-bias / post-relu).
    bytes_per_col = (2 * _round8(f_in) * elem_in
                     + 2 * _round8(f_out) * 4
                     + 3 * _round8(hidden) * 4)

    # Tile selection: as large as possible (amortize ~0.35 us/step overhead),
    # capped for VMEM (v7x-safe), >= 2 grid steps when possible (megacore).
    tile_b = min(tile_b, (40 << 20) // bytes_per_col)
    tile_b = max(128, (tile_b // 128) * 128)
    if b >= 256:
        tile_b = min(tile_b, _round_up((b + 1) // 2, 128))
    tile_b = min(tile_b, b)
    grid = (pl.cdiv(b, tile_b),)          # ragged last block is masked by Pallas

    vmem_limit = min(int(bytes_per_col * tile_b * 1.25) + (8 << 20), 56 << 20)

    xdt = jnp.bfloat16 if stream_in_bf16 else jnp.float32
    x_c = x_t.astype(xdt)                 # streamed tensor (optionally bf16 DMA)
    w1_t = w1.T.astype(xdt)               # [hidden, f_in]   VMEM-resident
    w2_t = w2.T.astype(xdt)               # [f_out, hidden]  VMEM-resident
    b1_c = b1.reshape(hidden, 1).astype(jnp.float32)
    b2_c = b2.reshape(f_out, 1).astype(jnp.float32)

    flops = 2 * b * (f_in * hidden + hidden * f_out)
    bytes_accessed = (x_c.size * x_c.dtype.itemsize + b * f_out * 4
                      + (w1.size + b1.size + w2.size + b2.size) * 4)

    out_t = pl.pallas_call(
        mlp_kernel,
        out_shape=jax.ShapeDtypeStruct((f_out, b), jnp.float32),
        grid=grid,
        in_specs=[
            pl.BlockSpec((f_in, tile_b), lambda i: (0, i)),   # x^T : streamed tiles
            pl.BlockSpec((hidden, f_in), lambda i: (0, 0)),   # W1^T: VMEM-resident
            pl.BlockSpec((hidden, 1), lambda i: (0, 0)),      # b1  : VMEM-resident
            pl.BlockSpec((f_out, hidden), lambda i: (0, 0)),  # W2^T: VMEM-resident
            pl.BlockSpec((f_out, 1), lambda i: (0, 0)),       # b2  : VMEM-resident
        ],
        out_specs=pl.BlockSpec((f_out, tile_b), lambda i: (0, i)),
        compiler_params=pltpu.CompilerParams(
            dimension_semantics=("parallel",),
            vmem_limit_bytes=vmem_limit),
        cost_estimate=pl.CostEstimate(
            flops=flops, transcendentals=0, bytes_accessed=bytes_accessed),
    )(x_c, w1_t, b1_c, w2_t, b2_c)
    return out_t                                          # [f_out, batch]


def mlp_forward(x, w1, b1, w2, b2, *, tile_b=65536, stream_in_bf16=False):
    """Batch-major fused MLP matching the PyTorch module: y = relu(x@w1+b1)@w2+b2.

    x  : [batch, f_in]     w1 : [f_in, hidden]   b1 : [hidden]
    w2 : [hidden, f_out]   b2 : [f_out]          returns [batch, f_out] float32.
    """
    batch, _ = x.shape
    f_out = w2.shape[1]
    if batch == 0:
        return jnp.zeros((0, f_out), jnp.float32)

    # Pad the batch only to a multiple of 128 (and only when needed); the grid
    # handles any remaining raggedness vs. tile_b.
    b_pad = _round_up(batch, 128)
    x_t = x.T                                             # [f_in, batch]
    if b_pad != batch:
        x_t = jnp.pad(x_t, ((0, 0), (0, b_pad - batch)))

    y_t = mlp_forward_t(x_t, w1, b1, w2, b2,
                        tile_b=tile_b, stream_in_bf16=stream_in_bf16)
    return y_t[:, :batch].T                               # [batch, f_out]


def init_params(key, features_in=2, hidden=10, features_out=3):
    """Deterministic init mirroring nn.Linear's U(-1/sqrt(fan_in), +1/sqrt(fan_in))."""
    k1, k2, k3, k4 = jax.random.split(key, 4)
    lim1 = 1.0 / jnp.sqrt(features_in)
    lim2 = 1.0 / jnp.sqrt(hidden)
    w1 = jax.random.uniform(k1, (features_in, hidden), jnp.float32, -lim1, lim1)
    b1 = jax.random.uniform(k2, (hidden,), jnp.float32, -lim1, lim1)
    w2 = jax.random.uniform(k3, (hidden, features_out), jnp.float32, -lim2, lim2)
    b2 = jax.random.uniform(k4, (features_out,), jnp.float32, -lim2, lim2)
    return w1, b1, w2, b2


if __name__ == "__main__":
    key = jax.random.PRNGKey(0)
    kx, kx2, kx3, kp = jax.random.split(key, 4)

    features_in, hidden, features_out = 2, 10, 3
    w1, b1, w2, b2 = init_params(kp, features_in, hidden, features_out)

    def ref_mlp(x):
        return jnp.maximum(x @ w1 + b1, 0.0) @ w2 + b2

    # Small batch (matches the PyTorch module's expected usage).
    x = jax.random.normal(kx, (8, features_in), jnp.float32)
    out = jax.block_until_ready(mlp_forward(x, w1, b1, w2, b2))
    assert out.shape == (8, features_out)
    assert jnp.allclose(out, ref_mlp(x), atol=1e-5, rtol=1e-5)

    # Batch not a multiple of 128: exercises pad-to-128 + ragged (masked) last block.
    x2 = jax.random.normal(kx2, (300, features_in), jnp.float32)
    out2 = jax.block_until_ready(mlp_forward(x2, w1, b1, w2, b2))
    assert out2.shape == (300, features_out)
    assert jnp.allclose(out2, ref_mlp(x2), atol=1e-5, rtol=1e-5)

    # Multi-step grid with an explicit small tile: exercises the pipelined path
    # and the feature-major (zero-relayout) entry point.
    x3 = jax.random.normal(kx3, (1024, features_in), jnp.float32)
    out3_t = jax.block_until_ready(
        mlp_forward_t(x3.T, w1, b1, w2, b2, tile_b=256))
    assert out3_t.shape == (features_out, 1024)
    assert jnp.allclose(out3_t.T, ref_mlp(x3), atol=1e-5, rtol=1e-5)

    print("KERNEL_OK")
</pallas_src>

<mosaic_0001>
module attributes {stable_mosaic.version = 11 : i64} {
  func.func @mlp_kernel(%arg0: i32, %arg1: memref<2x128xf32, #tpu.memory_space<vmem>>, %arg2: memref<10x2xf32, #tpu.memory_space<vmem>>, %arg3: memref<10x1xf32, #tpu.memory_space<vmem>>, %arg4: memref<3x10xf32, #tpu.memory_space<vmem>>, %arg5: memref<3x1xf32, #tpu.memory_space<vmem>>, %arg6: memref<3x128xf32, #tpu.memory_space<vmem>>) attributes {dimension_semantics = [#tpu.dimension_semantics<parallel>], iteration_bounds = array<i64: 1>, scalar_prefetch = 0 : i64, scratch_operands = 0 : i64, tpu.core_type = #tpu.core_type<tc>, window_params = [{transform_indices = @transform_0, window_bounds = array<i64: 2, 128>}, {pipeline_mode = #tpu.pipeline_mode<synchronous>, transform_indices = @transform_1, window_bounds = array<i64: 10, 2>}, {pipeline_mode = #tpu.pipeline_mode<synchronous>, transform_indices = @transform_2, window_bounds = array<i64: 10, 1>}, {pipeline_mode = #tpu.pipeline_mode<synchronous>, transform_indices = @transform_3, window_bounds = array<i64: 3, 10>}, {pipeline_mode = #tpu.pipeline_mode<synchronous>, transform_indices = @transform_4, window_bounds = array<i64: 3, 1>}, {transform_indices = @transform_5, window_bounds = array<i64: 3, 128>}]} {
    %c0 = arith.constant 0 : index
    %c0_0 = arith.constant 0 : index
    %0 = vector.load %arg2[%c0, %c0_0] : memref<10x2xf32, #tpu.memory_space<vmem>>, vector<10x2xf32>
    %c0_1 = arith.constant 0 : index
    %c0_2 = arith.constant 0 : index
    %1 = vector.load %arg1[%c0_1, %c0_2] : memref<2x128xf32, #tpu.memory_space<vmem>>, vector<2x128xf32>
    %cst = arith.constant dense<0.000000e+00> : vector<10x128xf32>
    %2 = tpu.matmul %0, %1, %cst {dimension_numbers = #tpu.dot_dimension_numbers<[1], [0], [0], [1], [0, 0, 1, 1], [], []>} : vector<10x2xf32>, vector<2x128xf32>, vector<10x128xf32> -> vector<10x128xf32>
    %c0_3 = arith.constant 0 : index
    %c0_4 = arith.constant 0 : index
    %3 = vector.load %arg3[%c0_3, %c0_4] : memref<10x1xf32, #tpu.memory_space<vmem>>, vector<10x1xf32>
    %4 = vector.broadcast %3 : vector<10x1xf32> to vector<10x128xf32>
    %5 = arith.addf %2, %4 : vector<10x128xf32>
    %cst_5 = arith.constant 0.000000e+00 : f32
    %6 = vector.broadcast %cst_5 : f32 to vector<10x128xf32>
    %7 = arith.maximumf %5, %6 : vector<10x128xf32>
    %c0_6 = arith.constant 0 : index
    %c0_7 = arith.constant 0 : index
    %8 = vector.load %arg4[%c0_6, %c0_7] : memref<3x10xf32, #tpu.memory_space<vmem>>, vector<3x10xf32>
    %cst_8 = arith.constant dense<0.000000e+00> : vector<3x128xf32>
    %9 = tpu.matmul %8, %7, %cst_8 {dimension_numbers = #tpu.dot_dimension_numbers<[1], [0], [0], [1], [0, 0, 1, 1], [], []>} : vector<3x10xf32>, vector<10x128xf32>, vector<3x128xf32> -> vector<3x128xf32>
    %c0_9 = arith.constant 0 : index
    %c0_10 = arith.constant 0 : index
    %10 = vector.load %arg5[%c0_9, %c0_10] : memref<3x1xf32, #tpu.memory_space<vmem>>, vector<3x1xf32>
    %11 = vector.broadcast %10 : vector<3x1xf32> to vector<3x128xf32>
    %12 = arith.addf %9, %11 : vector<3x128xf32>
    %c0_11 = arith.constant 0 : index
    %c0_12 = arith.constant 0 : index
    %13 = vector.load %arg6[%c0_11, %c0_12] : memref<3x128xf32, #tpu.memory_space<vmem>>, vector<3x128xf32>
    tpu.vector_store %arg6[%c0_11, %c0_12], %12 {strides = array<i32>} : memref<3x128xf32, #tpu.memory_space<vmem>>, vector<3x128xf32>,
    return
  }
  func.func @transform_0(%arg0: i32) -> (i32, i32) {
    %c0_i32 = arith.constant 0 : i32
    %c0_i32_0 = arith.constant 0 : i32
    return %c0_i32, %arg0 : i32, i32
  }
  func.func @transform_1(%arg0: i32) -> (i32, i32) {
    %c0_i32 = arith.constant 0 : i32
    %c0_i32_0 = arith.constant 0 : i32
    %c0_i32_1 = arith.constant 0 : i32
    return %c0_i32, %c0_i32_0 : i32, i32
  }
  func.func @transform_2(%arg0: i32) -> (i32, i32) {
    %c0_i32 = arith.constant 0 : i32
    %c0_i32_0 = arith.constant 0 : i32
    %c0_i32_1 = arith.constant 0 : i32
    return %c0_i32, %c0_i32_0 : i32, i32
  }
  func.func @transform_3(%arg0: i32) -> (i32, i32) {
    %c0_i32 = arith.constant 0 : i32
    %c0_i32_0 = arith.constant 0 : i32
    %c0_i32_1 = arith.constant 0 : i32
    return %c0_i32, %c0_i32_0 : i32, i32
  }
  func.func @transform_4(%arg0: i32) -> (i32, i32) {
    %c0_i32 = arith.constant 0 : i32
    %c0_i32_0 = arith.constant 0 : i32
    %c0_i32_1 = arith.constant 0 : i32
    return %c0_i32, %c0_i32_0 : i32, i32
  }
  func.func @transform_5(%arg0: i32) -> (i32, i32) {
    %c0_i32 = arith.constant 0 : i32
    %c0_i32_0 = arith.constant 0 : i32
    return %c0_i32, %arg0 : i32, i32
  }
}

</mosaic_0001>

<bundles_post_ra>
// kernel: tpu_custom_call.1
= control target key start
LH: loop header
LB: loop body
LE: loop exit
PB: predicated region body
PF: predicated region fallthrough
CT: control target
= control target key end

     0   :  { %vm43_vm0 = vcmask 1041408   ;;  %vm36_vm1 = vcmask 15360   ;;  %s218_s0 = inlined_call_operand.vmem [shape: f32[2,128], index: 0, kind: input, shape index: {}]   ;;  %s219_s1 = inlined_call_operand.vmem [shape: f32[10,2], index: 1, kind: input, shape index: {}]   ;;  %s220_s2 = inlined_call_operand.vmem [shape: f32[10,1], index: 2, kind: input, shape index: {}]   ;;  %s221_s3 = inlined_call_operand.vmem [shape: f32[3,10], index: 3, kind: input, shape index: {}]   ;;  %s222_s4 = inlined_call_operand.vmem [shape: f32[3,1], index: 4, kind: input, shape index: {}]   ;;  %s223_s5 = inlined_call_operand.hbm [shape: f32[3,128], index: 5, kind: output, shape index: {}]  }
   0x1   :  { %v23_v0 = vld [vmem:[%s218_s0] sm:$0x3]  ;;  %v22_v2 = vld [vmem:[%s219_s1 + $0x8] sm:$0x3] }
   0x2   :  { %v21_v1 = vld [vmem:[%s219_s1] sm:$0xff]  ;;  %123 = vmatpush.msk.msra.mxu0 %vm43_vm0, %v23_v0  ;;  %128 = vmatpush.msk.msra.mxu2 %vm43_vm0, %v23_v0  ;;  %v25_v3 = vld [vmem:[%s220_s2 + $0x8] sm:$0x3] }
   0x3   :  { %124 = vmatmul.msk.f32.vlgmr.msra.gmra.mxu0 %vm36_vm1, %v21_v1  ;;  %125 = vmatmul.msk.f32.vlgmr.msra.gmra.mxu2 %vm36_vm1, %v22_v2 }
   0x4   :  { %10 = vsyncpa [#allocation3], 0  ;;  %v159_v4 = vmov 0   ;;  %v24_v5 = vld [vmem:[%s220_s2] sm:$0xff]  ;;  %vm79_vm2 = vcmask 80896   ;;  %s160_s2 = smov [#allocation2]  }
   0x5   :  { %131 = vset.pattern.permute.xlu0 %v159_v4  ;;  %132 = vset.pattern.permute.xlu1 %v159_v4  ;;  %v73_v6 = vld [vmem:[%s222_s4] sm:$0x7]  ;;  %s112_s4 = sshll.u32 %s160_s2, 4  ;;  %s114_s7 = sshll.u32 %s223_s5, 4  ;;  %s113_s4 = int_to_ptr.vmem [resolvable:$true] %s112_s4  ;;  %s115_s7 = int_to_ptr.hbm [resolvable:$true] %s114_s7 }
   0x6   :  { %33 = vperm.xlu0 %131, %v25_v3   ;;  %76 = vperm.xlu1 %132, %v73_v6   ;;  %v72_v15 = vld [vmem:[%s221_s3] sm:$0x7] }
   0xe   :  { %28 = vperm.xlu0 %131, %v24_v5  }
  0x78   :  { %v34_v7 = vpop.permute.xlu0 %33  ;;  %v77_v16 = vpop.permute.xlu1 %76 }
  0x80   :  { %v29_v8 = vpop.permute.xlu0 %28  ;;  %v64_v9 = vpop.f32.mrf.mxu0 }
  0x81   :  { %v65_v11 = vadd.f32 %v64_v9, %v29_v8 }
  0x83   :  { %v70_v14 = vmax.f32 %v65_v11, 0.0 }
  0x86   :  { %v67_v10 = vpop.f32.mrf.mxu2 }
  0x87   :  { %v68_v12 = vadd.f32 %v67_v10, %v34_v7 }
  0x89   :  { %v71_v13 = vmax.f32 %v68_v12, 0.0 }
  0x8b   :  { %126 = vmatpush.msk.msra.mxu1 %vm43_vm0, %v71_v13 }
  0x8d   :  { %101 = vmatpush.msra.mxu1 %v70_v14 }
  0x8e   :  { %127 = vmatmul.msk.f32.vlgmr.msra.gmra.mxu1 %vm79_vm2, %v72_v15 }
 0x10b   :  { %v103_v17 = vpop.f32.mrf.mxu1 }
 0x10c   :  { %v104_v18 = vadd.f32 %v103_v17, %v77_v16 }
 0x10e   :  { %106 = vst [vmem:[#allocation2] sm:$0x7] %v104_v18 }
 0x10f   :  { %117 = dma.vmem_to_hbm [thread:$0]  %s113_s4, 64, %s115_s7, [#allocation3]  }
 0x110   :  { %157 = dma.done.wait [#allocation3], 64  }
 0x111   :  { %158 = vsyncadd [#allocation3], 4294967232 }
 0x112   :  { %122 = vsyncpa [#allocation3], 1 }

</bundles_post_ra>
